<compile_context>
chip_gen: v7x
topology: tpu7x:2x2x1
jax: 0.10.0
libtpu: 0.0.40
codegen_flags: <defaults>
</compile_context>

<pallas_src>
import functools

import jax
import jax.numpy as jnp
from jax.experimental import pallas as pl
from jax.experimental.pallas import tpu as pltpu

_SMEM = pl.BlockSpec(memory_space=pltpu.MemorySpace.SMEM)


def _make_fwd_loss_kernel(idx: int):
    """Kernel specialized on the (static) chosen linear layer index."""

    def kernel(w_ref, t_ref, y_ref, l_ref):
        # forward() hard-codes the input to Tensor([1.0]) and Linear(1,1,
        # bias=False) is a single multiply, so y = 1.0 * w[idx] = w[idx].
        y = w_ref[idx]
        y_ref[0] = y
        d = y - t_ref[0]
        l_ref[0] = d * d

    return kernel


@functools.lru_cache(maxsize=3)
def _get_fwd_loss_call(choice: int):
    """Cached pallas_call specialization for a given static choice (1..3)."""
    return pl.pallas_call(
        _make_fwd_loss_kernel(choice - 1),
        out_shape=(
            jax.ShapeDtypeStruct((1,), jnp.float32),  # forward output
            jax.ShapeDtypeStruct((1,), jnp.float32),  # fused loss
        ),
        in_specs=[_SMEM, _SMEM],
        out_specs=(_SMEM, _SMEM),
    )


def _check_weights(weights):
    if weights.shape != (3, 1, 1):
        raise ValueError(
            "weights must be stacked (3, 1, 1) = "
            "[choice1.weight, choice2.weight, choice3.weight], got "
            f"{weights.shape}")


@functools.partial(jax.jit, static_argnums=0)
def minimal_conditional_forward_and_loss(choice: int, weights: jax.Array,
                                         target: jax.Array):
    """weights: (3, 1, 1) stacked [choice1.weight, choice2.weight, choice3.weight].

    Returns (output, loss), both shape (1,) float32.
    """
    if choice not in (1, 2, 3):
        raise Exception("Invalid input:", choice)
    _check_weights(weights)
    w = weights.reshape((3,)).astype(jnp.float32)       # fused under jit
    t = jnp.asarray(target, dtype=jnp.float32).reshape((1,))
    y, l = _get_fwd_loss_call(choice)(w, t)
    return y, l


@functools.partial(jax.jit, static_argnums=0)
def minimal_conditional_forward(choice: int, weights: jax.Array) -> jax.Array:
    """Forward-only path; matches PyTorch's (1,)-shaped output."""
    if choice not in (1, 2, 3):
        raise Exception("Invalid input:", choice)
    _check_weights(weights)
    w = weights.reshape((3,)).astype(jnp.float32)
    t = jnp.zeros((1,), dtype=jnp.float32)              # compiled constant
    y, _ = _get_fwd_loss_call(choice)(w, t)
    return y


if __name__ == "__main__":
    key = jax.random.PRNGKey(0)

    # Parameters: nn.init.constant_(w, 0) for all three choices -> zeros.
    weights = jnp.zeros((3, 1, 1), dtype=jnp.float32)

    # Deterministically pick which branch to exercise (host int -> static arg).
    choice = int(jax.random.randint(key, (), 1, 4))  # in {1, 2, 3}

    target = jnp.array([2.0], dtype=jnp.float32)

    out, loss_val = minimal_conditional_forward_and_loss(choice, weights, target)
    out, loss_val = jax.block_until_ready((out, loss_val))

    # Reference check: zero weight * 1.0 == 0.0, shape (1,); loss = (0-2)^2 = 4
    assert out.shape == (1,), out.shape
    assert out.dtype == jnp.float32, out.dtype
    assert float(out[0]) == 0.0, float(out[0])
    assert loss_val.shape == (1,), loss_val.shape
    assert float(loss_val[0]) == 4.0, float(loss_val[0])

    # Forward-only path (matches module.forward semantics exactly).
    out2 = jax.block_until_ready(minimal_conditional_forward(choice, weights))
    assert out2.shape == (1,) and float(out2[0]) == 0.0

    # Exercise all three branches to confirm the cached specializations work.
    for c in (1, 2, 3):
        w_c = weights.at[c - 1, 0, 0].set(float(c))
        y_c, l_c = jax.block_until_ready(
            minimal_conditional_forward_and_loss(c, w_c, target))
        assert float(y_c[0]) == float(c), (c, float(y_c[0]))
        assert float(l_c[0]) == (float(c) - 2.0) ** 2, (c, float(l_c[0]))

    print("KERNEL_OK")
</pallas_src>

<mosaic_0001>
module attributes {stable_mosaic.version = 11 : i64} {
  func.func @kernel(%arg0: memref<3xf32, #tpu.memory_space<smem>>, %arg1: memref<1xf32, #tpu.memory_space<smem>>, %arg2: memref<1xf32, #tpu.memory_space<smem>>, %arg3: memref<1xf32, #tpu.memory_space<smem>>) attributes {dimension_semantics = [], scalar_prefetch = 0 : i64, scratch_operands = 0 : i64, tpu.core_type = #tpu.core_type<tc>} {
    %c1 = arith.constant 1 : index
    %0 = memref.load %arg0[%c1] : memref<3xf32, #tpu.memory_space<smem>>
    %c0 = arith.constant 0 : index
    %1 = memref.load %arg2[%c0] : memref<1xf32, #tpu.memory_space<smem>>
    memref.store %0, %arg2[%c0] : memref<1xf32, #tpu.memory_space<smem>>
    %c0_0 = arith.constant 0 : index
    %2 = memref.load %arg1[%c0_0] : memref<1xf32, #tpu.memory_space<smem>>
    %3 = arith.subf %0, %2 : f32
    %4 = arith.mulf %3, %3 : f32
    %c0_1 = arith.constant 0 : index
    %5 = memref.load %arg3[%c0_1] : memref<1xf32, #tpu.memory_space<smem>>
    memref.store %4, %arg3[%c0_1] : memref<1xf32, #tpu.memory_space<smem>>
    return
  }
}

</mosaic_0001>

<bundles_post_ra>
// kernel: minimal_conditional_forward_and_loss.1
= control target key start
LH: loop header
LB: loop body
LE: loop exit
PB: predicated region body
PF: predicated region fallthrough
CT: control target
= control target key end

     0   :  { %10 = vsyncpa [#allocation5], 0  ;;  %s158_s0 = inlined_call_operand.vmem [shape: f32[3], index: 0, kind: input, shape index: {}]   ;;  %s159_s1 = inlined_call_operand.<no memory space> [shape: f32[1], index: 1, kind: input, shape index: {}]   ;;  %s160_s2 = inlined_call_operand.hbm [shape: f32[1], index: 2, kind: output, shape index: {0}]   ;;  %s161_s3 = inlined_call_operand.hbm [shape: f32[1], index: 3, kind: output, shape index: {1}]  }
   0x1   :  { %11 = vsyncpa [#allocation4], 0 }
   0x2   :  { %12 = vsyncpa [#allocation8], 0  ;;  %s19_s14 = sshll.u32 %s158_s0, 4  ;;  %s20_s14 = int_to_ptr.vmem [resolvable:$true] %s19_s14 }
   0x3   :  { %s67_s15 = scalar_lea.vmem %s20_s14, 16  ;;  %p72_p1 = scmp.lt.s32.totalorder %s20_s14, %s20_s14 }
   0x4   :  { %p68_p0 = scmp.ne.s32.totalorder %s20_s14, %s67_s15  ;;  %p73_p2 = scmp.lt.s32.totalorder %s67_s15, %s67_s15 }
   0x6   :  { %p74_p3 = por %p73_p2, %p72_p1 }
   0x8   :  { %p75_p4 = pnand %p74_p3, %p68_p0 }
   0xa   :  { %78 = shalt.err (!%p75_p4)
}
   0xb   :  { %s105_s16 = smov [#allocation3]  }
   0xc   :  { %22 = dma.vmem_to_smem %s20_s14, 16, %s105_s16, [#allocation5]  }
   0xd   :  { %99 = dma.done.wait [#allocation5], 16  }
   0xe   :  { %100 = vsyncadd [#allocation5], 4294967280 }
   0xf   :  { %28 = sfence }
  0x10   :  { %s63_s17 = sld [smem:[#allocation3 + $0x1]]  ;;  %s79_s20 = scalar_lea.hbm %s160_s2, 16 }
  0x11   :  { %p80_p5 = scmp.ne.s32.totalorder %s160_s2, %s79_s20  ;;  %p83_p6 = scmp.lt.u32.totalorder %s79_s20, %s160_s2 }
  0x13   :  { %p85_p7 = pnand %p83_p6, %p80_p5 }
  0x16   :  { %31 = sst [smem:[#allocation6]] %s63_s17 }
  0x17   :  { %88 = shalt.err (!%p85_p7)
}
  0x18   :  { %s106_s24 = smov [#allocation6]   ;;  %s33_s29 = ssub.f32 %s63_s17, %s159_s1 }
  0x19   :  { %44 = dma.smem_to_hbm %s106_s24, 16, %s160_s2, [#allocation4]  }
  0x1a   :  { %s34_s30 = smul.f32 %s33_s29, %s33_s29  ;;  %s89_s6 = scalar_lea.hbm %s161_s3, 16 }
  0x1b   :  { %p90_p8 = scmp.ne.s32.totalorder %s161_s3, %s89_s6  ;;  %p93_p9 = scmp.lt.u32.totalorder %s89_s6, %s161_s3 }
  0x1c   :  { %36 = sst [smem:[#allocation7]] %s34_s30 }
  0x1d   :  { %p95_p10 = pnand %p93_p9, %p90_p8 }
  0x1f   :  { %98 = shalt.err (!%p95_p10)
}
  0x20   :  { %s107_s2 = smov [#allocation7]  }
  0x21   :  { %52 = dma.smem_to_hbm %s107_s2, 16, %s161_s3, [#allocation8]  }
  0x22   :  { %101 = dma.done.wait [#allocation4], 16  }
  0x23   :  { %102 = vsyncadd [#allocation4], 4294967280 }
  0x24   :  { %103 = dma.done.wait [#allocation8], 16  }
  0x25   :  { %104 = vsyncadd [#allocation8], 4294967280 }
  0x26   :  { %59 = sfence }
  0x27   :  { %60 = vsyncpa [#allocation4], 1 }
  0x28   :  { %61 = vsyncpa [#allocation8], 1 }
  0x29   :  { %62 = vsyncpa [#allocation5], 1 }

</bundles_post_ra>
